<compile_context>
chip_gen: v7x
topology: tpu7x:2x2x1
jax: 0.10.0
libtpu: 0.0.40
codegen_flags: <defaults>
</compile_context>

<pallas_src>
import jax
import jax.numpy as jnp
from jax.experimental import pallas as pl
from jax.experimental.pallas import tpu as pltpu


def _round_up(a: int, b: int) -> int:
    return (a + b - 1) // b * b


# --------------------------------------------------------------------------------------
# Kernel
# --------------------------------------------------------------------------------------
def _flatten_head_kernel(x_ref, w_ref, b_ref, o_ref, acc_ref):
    # x_ref: [TM, TK] (native dtype, streamed), w_ref: [TK, TN] (bf16),
    # b_ref: [1, TN] (f32), o_ref: [TM, TN], acc_ref: [TM, TN] f32 scratch.
    k = pl.program_id(2)

    @pl.when(k == 0)
    def _init():
        acc_ref[...] = jnp.zeros_like(acc_ref)

    w = w_ref[...]
    # Cast to the compute dtype in-VMEM (keeps HBM traffic at the native-dtype cost).
    acc_ref[...] += jnp.dot(x_ref[...].astype(w.dtype), w,
                            preferred_element_type=jnp.float32)

    @pl.when(k == pl.num_programs(2) - 1)
    def _finalize():
        o_ref[...] = (acc_ref[...] + b_ref[...]).astype(o_ref.dtype)


# --------------------------------------------------------------------------------------
# One-time parameter prep (do NOT call per forward)
# --------------------------------------------------------------------------------------
def prepare_flatten_head_params(weight, bias, compute_dtype=jnp.bfloat16):
    """weight: [tw, nf] (nn.Linear layout), bias: [tw].

    Returns (w_t_padded [nf, tw_pad] compute_dtype, bias_padded [1, tw_pad] f32, tw),
    with tw_pad rounded up to 128 so output stores are lane-dense (unmasked vst).
    """
    tw, nf = weight.shape
    tw_pad = _round_up(tw, 128)
    w_t = jnp.zeros((nf, tw_pad), compute_dtype)
    w_t = w_t.at[:, :tw].set(weight.T.astype(compute_dtype))
    b = jnp.zeros((1, tw_pad), jnp.float32)
    b = b.at[:, :tw].set(bias.astype(jnp.float32))
    return w_t, b, tw


# --------------------------------------------------------------------------------------
# Generation-aware VMEM sizing
# --------------------------------------------------------------------------------------
def _vmem_budget_and_limit():
    """Budget for tile sizing + explicit scoped-VMEM limit for the compiler."""
    try:
        cap = int(pltpu.get_tpu_info().vmem_capacity_bytes)
    except Exception:
        cap = 64 << 20  # conservative fallback (v7x per-core VMEM)
    budget = min(cap // 2, 64 << 20)              # 64 MiB on v5e/v6e, 32 MiB on v7x
    limit = max(budget, min(cap - (8 << 20), budget + (24 << 20)))
    return budget, limit


def _choose_tiles(M, nf, tw_pad, x_bytes, out_bytes, budget):
    """Pick (TM, TN, TK). TK always divides nf exactly (no garbage in the accumulator)."""
    # N tile over the 128-padded output width.
    tn = tw_pad
    if tw_pad > 512:
        for cand in (512, 256, 128):
            if tw_pad % cand == 0:
                tn = cand
                break

    def footprint(tm, tk, tn_):
        return (2 * tm * tk * x_bytes        # double-buffered x tiles (native dtype)
                + 2 * tk * tn_ * 2           # double-buffered bf16 weight tiles
                + 2 * tn_ * 4                # double-buffered f32 bias row
                + 2 * tm * tn_ * out_bytes   # double-buffered output tiles
                + tm * tn_ * 4)              # f32 accumulator scratch

    # K tile: whole nf if it fits at the minimum row tile, otherwise the largest
    # 128-multiple divisor of nf that does. (Non-128-multiple nf stays un-tiled.)
    k_cands = [nf]
    if nf % 128 == 0:
        d_total = nf // 128
        k_cands += [d * 128 for d in range(d_total, 0, -1) if d_total % d == 0]
    tk = k_cands[-1]
    for cand in k_cands:
        if footprint(8, cand, tn) <= budget:
            tk = cand
            break

    # M tile: largest MXU-friendly row tile that fits, capped near the real row count.
    tm = 8
    for cand in (2048, 1024, 512, 256, 128, 64, 32, 16, 8):
        if footprint(cand, tk, tn) <= budget:
            tm = cand
            break
    tm = min(tm, _round_up(M, 8))
    return tm, tn, tk


# --------------------------------------------------------------------------------------
# Forward
# --------------------------------------------------------------------------------------
def flatten_head_forward(x, w_t_padded, bias_padded, target_window, out_dtype=None):
    """x: [B, n_vars, d_model, patch_num]; w_t_padded: [nf, tw_pad]; bias_padded: [1, tw_pad]."""
    B, n_vars, d_model, patch_num = x.shape
    nf = d_model * patch_num
    nf_w, tw_pad = w_t_padded.shape
    assert nf_w == nf, (nf_w, nf)
    assert tw_pad % 128 == 0

    out_dtype = x.dtype if out_dtype is None else out_dtype
    x_bytes = jnp.dtype(x.dtype).itemsize
    w_bytes = jnp.dtype(w_t_padded.dtype).itemsize
    out_bytes = jnp.dtype(out_dtype).itemsize

    # Flatten(start_dim=-2) + fold batch dims; a free, contiguous reshape (no cast/pad copy).
    M = B * n_vars
    x_flat = x.reshape(M, nf)

    budget, vmem_limit = _vmem_budget_and_limit()
    tm, tn, tk = _choose_tiles(M, nf, tw_pad, x_bytes, out_bytes, budget)
    grid_m = pl.cdiv(M, tm)          # ragged last M tile handled by masked stores
    grid_n = tw_pad // tn            # tn divides tw_pad by construction
    grid_k = nf // tk                # tk divides nf by construction

    cost = pl.CostEstimate(
        flops=2 * M * nf * tw_pad,
        transcendentals=0,
        bytes_accessed=(M * nf * x_bytes + nf * tw_pad * w_bytes
                        + tw_pad * 4 + M * tw_pad * out_bytes),
    )

    out = pl.pallas_call(
        _flatten_head_kernel,
        out_shape=jax.ShapeDtypeStruct((M, tw_pad), out_dtype),
        grid_spec=pltpu.PrefetchScalarGridSpec(
            num_scalar_prefetch=0,
            grid=(grid_m, grid_n, grid_k),
            in_specs=[
                pl.BlockSpec((tm, tk), lambda i, j, k: (i, k)),   # streamed x (native dtype)
                pl.BlockSpec((tk, tn), lambda i, j, k: (k, j)),   # bf16 weight tiles
                pl.BlockSpec((1, tn), lambda i, j, k: (0, j)),    # f32 bias row
            ],
            out_specs=pl.BlockSpec((tm, tn), lambda i, j, k: (i, j)),
            scratch_shapes=[pltpu.VMEM((tm, tn), jnp.float32)],
        ),
        compiler_params=pltpu.CompilerParams(
            dimension_semantics=("parallel", "parallel", "arbitrary"),
            vmem_limit_bytes=int(vmem_limit),
        ),
        cost_estimate=cost,
    )(x_flat, w_t_padded, bias_padded)

    if tw_pad != target_window:
        out = out[:, :target_window]
    return out.reshape(B, n_vars, target_window)


# --------------------------------------------------------------------------------------
# Demo / self-test
# --------------------------------------------------------------------------------------
if __name__ == "__main__":
    # Small shapes consistent with the module.
    B, n_vars, d_model, patch_num = 2, 4, 16, 8
    nf = d_model * patch_num            # 128
    target_window = 96                  # typical CMamba horizon (not a multiple of 128)

    key = jax.random.PRNGKey(0)
    kx, kw, kb = jax.random.split(key, 3)

    x = jax.random.normal(kx, (B, n_vars, d_model, patch_num), dtype=jnp.float32)
    # Deterministic Linear params (shapes match nn.Linear(nf, target_window)).
    bound = 1.0 / (nf ** 0.5)
    weight = jax.random.uniform(kw, (target_window, nf), jnp.float32, -bound, bound)
    bias = jax.random.uniform(kb, (target_window,), jnp.float32, -bound, bound)

    # One-time parameter prep (transpose + lane padding + bf16 cast).
    w_t_padded, bias_padded, tw = prepare_flatten_head_params(weight, bias)

    fwd = jax.jit(lambda xx: flatten_head_forward(xx, w_t_padded, bias_padded, tw))
    out = jax.block_until_ready(fwd(x))
    assert out.shape == (B, n_vars, target_window)

    # Reference on the same bf16-rounded operands, full-precision f32 accumulation,
    # matching the kernel math (bf16 x bf16 products are exact in f32).
    x_q = x.astype(jnp.bfloat16).astype(jnp.float32)
    w_q = weight.astype(jnp.bfloat16).astype(jnp.float32)
    ref_q = jnp.einsum("bvf,tf->bvt", x_q.reshape(B, n_vars, nf), w_q,
                       precision=jax.lax.Precision.HIGHEST) + bias
    assert jnp.allclose(out.astype(jnp.float32), ref_q, atol=1e-3, rtol=1e-3)

    # Sanity vs full-precision reference (looser tolerance due to bf16 compute).
    ref = jnp.einsum("bvf,tf->bvt", x.reshape(B, n_vars, nf), weight,
                     precision=jax.lax.Precision.HIGHEST) + bias
    assert jnp.allclose(out.astype(jnp.float32), ref, atol=5e-2, rtol=5e-2)

    print("KERNEL_OK")
</pallas_src>

<mosaic_0001>
module attributes {stable_mosaic.version = 11 : i64} {
  func.func @_flatten_head_kernel(%arg0: i32, %arg1: i32, %arg2: i32, %arg3: memref<8x128xf32, #tpu.memory_space<vmem>>, %arg4: memref<128x128xbf16, #tpu.memory_space<vmem>>, %arg5: memref<1x128xf32, #tpu.memory_space<vmem>>, %arg6: memref<8x128xf32, #tpu.memory_space<vmem>>, %arg7: memref<8x128xf32, #tpu.memory_space<vmem>>) attributes {dimension_semantics = [#tpu.dimension_semantics<parallel>, #tpu.dimension_semantics<parallel>, #tpu.dimension_semantics<arbitrary>], iteration_bounds = array<i64: 1, 1, 1>, scalar_prefetch = 0 : i64, scratch_operands = 1 : i64, tpu.core_type = #tpu.core_type<tc>, window_params = [{transform_indices = @transform_0, window_bounds = array<i64: 8, 128>}, {transform_indices = @transform_1, window_bounds = array<i64: 128, 128>}, {transform_indices = @transform_2, window_bounds = array<i64: 1, 128>}, {transform_indices = @transform_3, window_bounds = array<i64: 8, 128>}]} {
    %c0_i32 = arith.constant 0 : i32
    %0 = arith.cmpi eq, %arg2, %c0_i32 : i32
    %1 = arith.extui %0 : i1 to i32
    %c0_i32_0 = arith.constant 0 : i32
    %2 = arith.cmpi ne, %1, %c0_i32_0 : i32
    scf.if %2 {
      %cst_10 = arith.constant 0.000000e+00 : f32
      %13 = vector.broadcast %cst_10 : f32 to vector<8x128xf32>
      %c0_11 = arith.constant 0 : index
      %c0_12 = arith.constant 0 : index
      %14 = vector.load %arg7[%c0_11, %c0_12] : memref<8x128xf32, #tpu.memory_space<vmem>>, vector<8x128xf32>
      tpu.vector_store %arg7[%c0_11, %c0_12], %13 {strides = array<i32>} : memref<8x128xf32, #tpu.memory_space<vmem>>, vector<8x128xf32>,
    } else {
    }
    %c0 = arith.constant 0 : index
    %c0_1 = arith.constant 0 : index
    %3 = vector.load %arg4[%c0, %c0_1] : memref<128x128xbf16, #tpu.memory_space<vmem>>, vector<128x128xbf16>
    %c0_2 = arith.constant 0 : index
    %c0_3 = arith.constant 0 : index
    %4 = vector.load %arg7[%c0_2, %c0_3] : memref<8x128xf32, #tpu.memory_space<vmem>>, vector<8x128xf32>
    %c0_4 = arith.constant 0 : index
    %c0_5 = arith.constant 0 : index
    %5 = vector.load %arg3[%c0_4, %c0_5] : memref<8x128xf32, #tpu.memory_space<vmem>>, vector<8x128xf32>
    %6 = arith.truncf %5 : vector<8x128xf32> to vector<8x128xbf16>
    %cst = arith.constant dense<0.000000e+00> : vector<8x128xf32>
    %7 = tpu.matmul %6, %3, %cst {dimension_numbers = #tpu.dot_dimension_numbers<[1], [0], [0], [1], [0, 0, 1, 1], [], []>} : vector<8x128xbf16>, vector<128x128xbf16>, vector<8x128xf32> -> vector<8x128xf32>
    %8 = arith.addf %4, %7 : vector<8x128xf32>
    %c0_6 = arith.constant 0 : index
    %c0_7 = arith.constant 0 : index
    %9 = vector.load %arg7[%c0_6, %c0_7] : memref<8x128xf32, #tpu.memory_space<vmem>>, vector<8x128xf32>
    tpu.vector_store %arg7[%c0_6, %c0_7], %8 {strides = array<i32>} : memref<8x128xf32, #tpu.memory_space<vmem>>, vector<8x128xf32>,
    %c0_i32_8 = arith.constant 0 : i32
    %10 = arith.cmpi eq, %arg2, %c0_i32_8 : i32
    %11 = arith.extui %10 : i1 to i32
    %c0_i32_9 = arith.constant 0 : i32
    %12 = arith.cmpi ne, %11, %c0_i32_9 : i32
    scf.if %12 {
      %c0_10 = arith.constant 0 : index
      %c0_11 = arith.constant 0 : index
      %13 = vector.load %arg7[%c0_10, %c0_11] : memref<8x128xf32, #tpu.memory_space<vmem>>, vector<8x128xf32>
      %c0_12 = arith.constant 0 : index
      %c0_13 = arith.constant 0 : index
      %14 = vector.load %arg5[%c0_12, %c0_13] : memref<1x128xf32, #tpu.memory_space<vmem>>, vector<1x128xf32>
      %15 = vector.broadcast %14 : vector<1x128xf32> to vector<8x128xf32>
      %16 = arith.addf %13, %15 : vector<8x128xf32>
      %c0_14 = arith.constant 0 : index
      %c0_15 = arith.constant 0 : index
      %17 = vector.load %arg6[%c0_14, %c0_15] : memref<8x128xf32, #tpu.memory_space<vmem>>, vector<8x128xf32>
      tpu.vector_store %arg6[%c0_14, %c0_15], %16 {strides = array<i32>} : memref<8x128xf32, #tpu.memory_space<vmem>>, vector<8x128xf32>,
    } else {
    }
    return
  }
  func.func @transform_0(%arg0: i32, %arg1: i32, %arg2: i32) -> (i32, i32) {
    %c0_i32 = arith.constant 0 : i32
    return %arg0, %arg2 : i32, i32
  }
  func.func @transform_1(%arg0: i32, %arg1: i32, %arg2: i32) -> (i32, i32) {
    %c0_i32 = arith.constant 0 : i32
    return %arg2, %arg1 : i32, i32
  }
  func.func @transform_2(%arg0: i32, %arg1: i32, %arg2: i32) -> (i32, i32) {
    %c0_i32 = arith.constant 0 : i32
    %c0_i32_0 = arith.constant 0 : i32
    return %c0_i32, %arg1 : i32, i32
  }
  func.func @transform_3(%arg0: i32, %arg1: i32, %arg2: i32) -> (i32, i32) {
    %c0_i32 = arith.constant 0 : i32
    return %arg0, %arg1 : i32, i32
  }
}

</mosaic_0001>

<bundles_post_ra>
// kernel: _lambda_.1
= control target key start
LH: loop header
LB: loop body
LE: loop exit
PB: predicated region body
PF: predicated region fallthrough
CT: control target
= control target key end

     0   :  { %v230_v1 = vmov 0.0   ;;  %vm231_vm0 = vmmov 0   ;;  %s295_s0 = inlined_call_operand.vmem [shape: f32[8,128], index: 0, kind: input, shape index: {}]   ;;  %s296_s1 = inlined_call_operand.vmem [shape: bf16[128,128], index: 1, kind: input, shape index: {}]   ;;  %s297_s2 = inlined_call_operand.vmem [shape: f32[1,128], index: 2, kind: input, shape index: {}]   ;;  %s298_s3 = inlined_call_operand.hbm [shape: f32[8,128], index: 3, kind: output, shape index: {}]  }
   0x1   :  { %v198_v0 = vld [vmem:[%s296_s1] sm:$0xff]   ;;  %175 = vmatprep.subr.bf16.mxu0 %v230_v1  ;;  %v199_v2 = vld [vmem:[%s296_s1 + $0x8] sm:$0xff]   ;;  %191 = vmatprep.mubr.msk.bf16.mxu0 %vm231_vm0, %v230_v1  ;;  %v200_v3 = vld [vmem:[%s296_s1 + $0x10] sm:$0xff]  }
   0x2   :  { %176 = vmatpush3.bf16.msra.mxu0 %v198_v0 }
   0x3   :  { %177 = vmatprep.subr.bf16.mxu0 %v230_v1 }
   0x6   :  { %178 = vmatpush3.bf16.msra.mxu0 %v199_v2 }
   0x7   :  { %179 = vmatprep.subr.bf16.mxu0 %v230_v1 }
   0x8   :  { %8 = vsyncpa [#allocation4], 0  ;;  %v201_v4 = vld [vmem:[%s296_s1 + $0x18] sm:$0xff]   ;;  %v202_v5 = vld [vmem:[%s296_s1 + $0x20] sm:$0xff]   ;;  %s232_s5 = smov [#allocation3]  }
   0x9   :  { %v203_v6 = vld [vmem:[%s296_s1 + $0x28] sm:$0xff]   ;;  %v204_v7 = vld [vmem:[%s296_s1 + $0x30] sm:$0xff]   ;;  %v205_v8 = vld [vmem:[%s296_s1 + $0x38] sm:$0xff]   ;;  %s149_s6 = sshll.u32 %s232_s5, 4  ;;  %s150_s6 = int_to_ptr.vmem [resolvable:$true] %s149_s6 }
   0xa   :  { %180 = vmatpush3.bf16.msra.mxu0 %v200_v3  ;;  %v38_v9 = vld [vmem:[%s295_s0] sm:$0xff]  ;;  %s206_s1 = scalar_lea.vmem %s150_s6, 128  ;;  %p211_p1 = scmp.lt.s32.totalorder %s150_s6, %s150_s6 }
   0xb   :  { %181 = vmatprep.subr.bf16.mxu0 %v230_v1  ;;  %v39_v10 = vpack.c.bf16 %v38_v9, %v38_v9  ;;  %v165_v11 = vld [vmem:[%s297_s2] ss:$0 sm:$0xff]  ;;  %p207_p0 = scmp.ne.s32.totalorder %s150_s6, %s206_s1  ;;  %p212_p2 = scmp.lt.s32.totalorder %s206_s1, %s206_s1 }
   0xd   :  { %p213_p3 = por %p212_p2, %p211_p1 }
   0xe   :  { %182 = vmatpush3.bf16.msra.mxu0 %v201_v4 }
   0xf   :  { %183 = vmatprep.subr.bf16.mxu0 %v230_v1  ;;  %p214_p4 = pnand %p213_p3, %p207_p0 }
  0x12   :  { %184 = vmatpush3.bf16.msra.mxu0 %v202_v5 }
  0x13   :  { %185 = vmatprep.subr.bf16.mxu0 %v230_v1 }
  0x16   :  { %186 = vmatpush3.bf16.msra.mxu0 %v203_v6 }
  0x17   :  { %187 = vmatprep.subr.bf16.mxu0 %v230_v1 }
  0x1a   :  { %188 = vmatpush3.bf16.msra.mxu0 %v204_v7 }
  0x1b   :  { %189 = vmatprep.subr.bf16.mxu0 %v230_v1 }
  0x1e   :  { %190 = vmatpush3.bf16.msra.mxu0 %v205_v8 }
  0x21   :  { %192 = vmatmul.mubr.bf16.vlgmr.msra.gmra.mrb[0].mxu0 %v39_v10 }
  0xf4   :  { %v122_v12 = vpop.f32.mrb[0].mxu0 }
  0xf5   :  { %v141_v13 = vadd.f32 %v165_v11, %v122_v12  ;;  %v193_v14 = vpop.f32.mrb[1].mxu0 }
  0xf6   :  { %v125_v15 = vpop.f32.mrb[2].mxu0 }
  0xf7   :  { %142 = vst [vmem:[#allocation3] sm:$0xff] %v141_v13  ;;  %v194_v16 = vpop.f32.mrb[3].mxu0 }
  0xf8   :  { %217 = shalt.err (!%p214_p4)
}
  0xf9   :  { %s218_s2 = scalar_lea.hbm %s298_s3, 128 }
  0xfa   :  { %p219_p5 = scmp.ne.s32.totalorder %s298_s3, %s218_s2  ;;  %p222_p6 = scmp.lt.u32.totalorder %s218_s2, %s298_s3 }
  0xfc   :  { %p224_p7 = pnand %p222_p6, %p219_p5 }
  0xfe   :  { %227 = shalt.err (!%p224_p7)
}
  0xff   :  { %152 = dma.vmem_to_hbm [thread:$0]  %s150_s6, 128, %s298_s3, [#allocation4]  }
 0x100   :  { %228 = dma.done.wait [#allocation4], 128  }
 0x101   :  { %229 = vsyncadd [#allocation4], 4294967168 }
 0x102   :  { %156 = vsyncpa [#allocation4], 1 }

</bundles_post_ra>
